<compile_context>
chip_gen: v7x
topology: tpu7x:2x2x1
jax: 0.10.0
libtpu: 0.0.40
codegen_flags: <defaults>
</compile_context>

<pallas_src>
import functools

import jax
import jax.numpy as jnp
from jax import lax
from jax.experimental import pallas as pl
from jax.experimental.pallas import tpu as pltpu


def head_attention_kernel(x_ref, w_ref, o_ref, *, batch, seq):
    # x_ref : (B*T, C) bf16   w_ref : (3, C, H) bf16   o_ref : (B*T, H) f32
    H = o_ref.shape[-1]
    x = x_ref[...]                                   # bf16, cast done in wrapper

    # QKV projection: three plain 2D matmuls (flattened batch), f32 accumulate.
    # Kept as three matmuls because H=16 < 128: a fused (C, 3H) operand would
    # force lane-misaligned slicing of the projection output.
    scale = jnp.float32(1.0 / (H ** 0.5))
    q = jnp.dot(x, w_ref[0], preferred_element_type=jnp.float32) * scale
    k = jnp.dot(x, w_ref[1], preferred_element_type=jnp.float32)
    v = jnp.dot(x, w_ref[2], preferred_element_type=jnp.float32)

    q = q.reshape(batch, seq, H).astype(jnp.bfloat16)
    k = k.reshape(batch, seq, H).astype(jnp.bfloat16)
    v = v.reshape(batch, seq, H).astype(jnp.bfloat16)

    # scores = q @ k^T (batched over B, contract last axes -> no explicit
    # transpose requested; at T=8/H=16 any RHS shuffle Mosaic inserts is noise).
    scores = lax.dot_general(
        q, k,
        dimension_numbers=(((2,), (2,)), ((0,), (0,))),
        preferred_element_type=jnp.float32)          # (B, T, T) f32

    # Causal mask (tril): position i attends to j <= i. Large finite negative
    # (not -inf) so a hypothetical fully-masked row can't produce 0/0 NaN.
    T = seq
    row = lax.broadcasted_iota(jnp.int32, (T, T), 0)
    col = lax.broadcasted_iota(jnp.int32, (T, T), 1)
    scores = jnp.where((row >= col)[None, :, :], scores, jnp.float32(-1e30))

    # Softmax over last dim in f32; divide replaced by EUP approx reciprocal.
    m = jnp.max(scores, axis=-1, keepdims=True)
    e = jnp.exp(scores - m)
    denom = jnp.sum(e, axis=-1, keepdims=True)
    p = e * pl.reciprocal(denom, approx=True)

    # attention = softmax(scores) @ v  -> (B, T, H), stored as (B*T, H) slab.
    attn = lax.dot_general(
        p.astype(jnp.bfloat16), v,
        dimension_numbers=(((2,), (1,)), ((0,), (0,))),
        preferred_element_type=jnp.float32)

    o_ref[...] = attn.reshape(batch * seq, H).astype(o_ref.dtype)


def head_attention(x, w_qkv):
    """x: (B, T, C) float; w_qkv: (3, C, H) pre-fused q/k/v weights.

    Returns (B, T, H) in x.dtype.
    """
    B, T, C = x.shape
    H = w_qkv.shape[-1]

    # bf16 operands (halves DMA bytes, removes in-kernel casts); no-op if the
    # caller already stores them in bf16.
    x_bf = x.astype(jnp.bfloat16).reshape(B * T, C)
    w_bf = w_qkv.astype(jnp.bfloat16)

    kernel = functools.partial(head_attention_kernel, batch=B, seq=T)

    out2d = pl.pallas_call(
        kernel,
        out_shape=jax.ShapeDtypeStruct((B * T, H), x.dtype),
        grid_spec=pltpu.PrefetchScalarGridSpec(
            num_scalar_prefetch=0,
            grid=(1,),                                   # single step: no
            in_specs=[                                   # per-step overhead
                pl.BlockSpec((B * T, C), lambda i: (0, 0)),
                pl.BlockSpec((3, C, H), lambda i: (0, 0, 0)),
            ],
            out_specs=pl.BlockSpec((B * T, H), lambda i: (0, 0)),
        ),
        compiler_params=pltpu.CompilerParams(
            dimension_semantics=("arbitrary",),
        ),
    )(x_bf, w_bf)

    return out2d.reshape(B, T, H)


def reference_head_attention(x, wq, wk, wv):
    q = x @ wq
    k = x @ wk
    v = x @ wv
    H = wq.shape[1]
    scores = jnp.einsum("btd,bsd->bts", q, k) / (H ** 0.5)
    T = x.shape[1]
    mask = jnp.tril(jnp.ones((T, T), dtype=bool))
    scores = jnp.where(mask[None], scores, -jnp.inf)
    p = jax.nn.softmax(scores, axis=-1)
    return jnp.einsum("bts,bsh->bth", p, v)


if __name__ == "__main__":
    # Small deterministic config consistent with the module:
    # embedding_dim=32, head_size=16, context_len=8 (== seq len), batch=2.
    B, T, C, H = 2, 8, 32, 16

    key = jax.random.PRNGKey(0)
    kx, kq, kk, kv = jax.random.split(key, 4)

    x = jax.random.normal(kx, (B, T, C), dtype=jnp.float32)
    # nn.Linear default init ~ U(-1/sqrt(C), 1/sqrt(C)); deterministic here.
    bound = 1.0 / (C ** 0.5)
    wq = jax.random.uniform(kq, (C, H), jnp.float32, -bound, bound)
    wk = jax.random.uniform(kk, (C, H), jnp.float32, -bound, bound)
    wv = jax.random.uniform(kv, (C, H), jnp.float32, -bound, bound)

    # Fuse q/k/v weights ONCE at parameter-init time (not per forward call);
    # stored bf16 so the kernel DMAs half the bytes with no per-call cast.
    w_qkv = jnp.stack([wq, wk, wv], axis=0).astype(jnp.bfloat16)

    out = head_attention(x, w_qkv)
    out = jax.block_until_ready(out)

    ref = reference_head_attention(x, wq, wk, wv)
    assert out.shape == (B, T, H)
    # bf16 MXU operands + approx reciprocal -> loosened tolerance vs f32 ref.
    assert jnp.allclose(out, ref, atol=2e-2, rtol=2e-2), (
        f"max abs err = {jnp.max(jnp.abs(out - ref))}"
    )

    print("KERNEL_OK")
</pallas_src>

<mosaic_0001>
module attributes {stable_mosaic.version = 11 : i64} {
  func.func @head_attention_kernel(%arg0: i32, %arg1: memref<16x32xbf16, #tpu.memory_space<vmem>>, %arg2: memref<3x32x16xbf16, #tpu.memory_space<vmem>>, %arg3: memref<16x16xf32, #tpu.memory_space<vmem>>) attributes {dimension_semantics = [#tpu.dimension_semantics<arbitrary>], iteration_bounds = array<i64: 1>, scalar_prefetch = 0 : i64, scratch_operands = 0 : i64, tpu.core_type = #tpu.core_type<tc>, window_params = [{pipeline_mode = #tpu.pipeline_mode<synchronous>, transform_indices = @transform_0, window_bounds = array<i64: 16, 32>}, {pipeline_mode = #tpu.pipeline_mode<synchronous>, transform_indices = @transform_1, window_bounds = array<i64: 3, 32, 16>}, {pipeline_mode = #tpu.pipeline_mode<synchronous>, transform_indices = @transform_2, window_bounds = array<i64: 16, 16>}]} {
    %c0 = arith.constant 0 : index
    %c0_0 = arith.constant 0 : index
    %0 = vector.load %arg1[%c0, %c0_0] : memref<16x32xbf16, #tpu.memory_space<vmem>>, vector<16x32xbf16>
    %c0_1 = arith.constant 0 : index
    %c0_2 = arith.constant 0 : index
    %c0_3 = arith.constant 0 : index
    %1 = vector.load %arg2[%c0_1, %c0_2, %c0_3] : memref<3x32x16xbf16, #tpu.memory_space<vmem>>, vector<1x32x16xbf16>
    %2 = vector.shape_cast %1 : vector<1x32x16xbf16> to vector<32x16xbf16>
    %cst = arith.constant dense<0.000000e+00> : vector<16x16xf32>
    %3 = tpu.matmul %0, %2, %cst {dimension_numbers = #tpu.dot_dimension_numbers<[1], [0], [0], [1], [0, 0, 1, 1], [], []>} : vector<16x32xbf16>, vector<32x16xbf16>, vector<16x16xf32> -> vector<16x16xf32>
    %cst_4 = arith.constant 2.500000e-01 : f32
    %4 = vector.broadcast %cst_4 : f32 to vector<16x16xf32>
    %5 = arith.mulf %3, %4 : vector<16x16xf32>
    %c1 = arith.constant 1 : index
    %c0_5 = arith.constant 0 : index
    %c0_6 = arith.constant 0 : index
    %6 = vector.load %arg2[%c1, %c0_5, %c0_6] : memref<3x32x16xbf16, #tpu.memory_space<vmem>>, vector<1x32x16xbf16>
    %7 = vector.shape_cast %6 : vector<1x32x16xbf16> to vector<32x16xbf16>
    %cst_7 = arith.constant dense<0.000000e+00> : vector<16x16xf32>
    %8 = tpu.matmul %0, %7, %cst_7 {dimension_numbers = #tpu.dot_dimension_numbers<[1], [0], [0], [1], [0, 0, 1, 1], [], []>} : vector<16x32xbf16>, vector<32x16xbf16>, vector<16x16xf32> -> vector<16x16xf32>
    %c2 = arith.constant 2 : index
    %c0_8 = arith.constant 0 : index
    %c0_9 = arith.constant 0 : index
    %9 = vector.load %arg2[%c2, %c0_8, %c0_9] : memref<3x32x16xbf16, #tpu.memory_space<vmem>>, vector<1x32x16xbf16>
    %10 = vector.shape_cast %9 : vector<1x32x16xbf16> to vector<32x16xbf16>
    %cst_10 = arith.constant dense<0.000000e+00> : vector<16x16xf32>
    %11 = tpu.matmul %0, %10, %cst_10 {dimension_numbers = #tpu.dot_dimension_numbers<[1], [0], [0], [1], [0, 0, 1, 1], [], []>} : vector<16x32xbf16>, vector<32x16xbf16>, vector<16x16xf32> -> vector<16x16xf32>
    %12 = vector.shape_cast %5 : vector<16x16xf32> to vector<2x8x16xf32>
    %13 = arith.truncf %12 : vector<2x8x16xf32> to vector<2x8x16xbf16>
    %14 = vector.shape_cast %8 : vector<16x16xf32> to vector<2x8x16xf32>
    %15 = arith.truncf %14 : vector<2x8x16xf32> to vector<2x8x16xbf16>
    %16 = vector.shape_cast %11 : vector<16x16xf32> to vector<2x8x16xf32>
    %17 = arith.truncf %16 : vector<2x8x16xf32> to vector<2x8x16xbf16>
    %cst_11 = arith.constant dense<0.000000e+00> : vector<2x8x8xf32>
    %18 = tpu.matmul %13, %15, %cst_11 {dimension_numbers = #tpu.dot_dimension_numbers<[2], [2], [1], [1], [0, 0, 0, 1, 1, 1], [0], [0]>} : vector<2x8x16xbf16>, vector<2x8x16xbf16>, vector<2x8x8xf32> -> vector<2x8x8xf32>
    %19 = tpu.iota {dimensions = array<i32: 0>} : vector<8x8xi32>
    %20 = tpu.iota {dimensions = array<i32: 1>} : vector<8x8xi32>
    %21 = arith.cmpi sge, %19, %20 : vector<8x8xi32>
    %22 = vector.shape_cast %21 : vector<8x8xi1> to vector<1x8x8xi1>
    %cst_12 = arith.constant -1.000000e+30 : f32
    %23 = vector.shape_cast %22 : vector<1x8x8xi1> to vector<1x8x8xi1>
    %24 = vector.broadcast %23 : vector<1x8x8xi1> to vector<2x8x8xi1>
    %25 = vector.broadcast %cst_12 : f32 to vector<2x8x8xf32>
    %26 = arith.select %24, %18, %25 : vector<2x8x8xi1>, vector<2x8x8xf32>
    %cst_13 = arith.constant dense<0xFF800000> : vector<2x8xf32>
    %27 = vector.multi_reduction <maximumf>, %26, %cst_13 [2] : vector<2x8x8xf32> to vector<2x8xf32>
    %28 = vector.shape_cast %27 : vector<2x8xf32> to vector<2x8x1xf32>
    %29 = vector.broadcast %28 : vector<2x8x1xf32> to vector<2x8x8xf32>
    %30 = arith.subf %26, %29 : vector<2x8x8xf32>
    %31 = math.exp %30 : vector<2x8x8xf32>
    %cst_14 = arith.constant dense<0.000000e+00> : vector<2x8xf32>
    %32 = vector.multi_reduction <add>, %31, %cst_14 [2] : vector<2x8x8xf32> to vector<2x8xf32>
    %33 = vector.shape_cast %32 : vector<2x8xf32> to vector<2x8x1xf32>
    %34 = tpu.reciprocal %33 {approx = true} : vector<2x8x1xf32> -> vector<2x8x1xf32>
    %35 = vector.broadcast %34 : vector<2x8x1xf32> to vector<2x8x8xf32>
    %36 = arith.mulf %31, %35 : vector<2x8x8xf32>
    %37 = arith.truncf %36 : vector<2x8x8xf32> to vector<2x8x8xbf16>
    %cst_15 = arith.constant dense<0.000000e+00> : vector<2x8x16xf32>
    %38 = tpu.matmul %37, %17, %cst_15 {dimension_numbers = #tpu.dot_dimension_numbers<[2], [1], [1], [2], [0, 0, 0, 1, 1, 2], [0], [0]>} : vector<2x8x8xbf16>, vector<2x8x16xbf16>, vector<2x8x16xf32> -> vector<2x8x16xf32>
    %39 = vector.shape_cast %38 : vector<2x8x16xf32> to vector<16x16xf32>
    %c0_16 = arith.constant 0 : index
    %c0_17 = arith.constant 0 : index
    %40 = vector.load %arg3[%c0_16, %c0_17] : memref<16x16xf32, #tpu.memory_space<vmem>>, vector<16x16xf32>
    tpu.vector_store %arg3[%c0_16, %c0_17], %39 {strides = array<i32>} : memref<16x16xf32, #tpu.memory_space<vmem>>, vector<16x16xf32>,
    return
  }
  func.func @transform_0(%arg0: i32) -> (i32, i32) {
    %c0_i32 = arith.constant 0 : i32
    %c0_i32_0 = arith.constant 0 : i32
    %c0_i32_1 = arith.constant 0 : i32
    return %c0_i32, %c0_i32_0 : i32, i32
  }
  func.func @transform_1(%arg0: i32) -> (i32, i32, i32) {
    %c0_i32 = arith.constant 0 : i32
    %c0_i32_0 = arith.constant 0 : i32
    %c0_i32_1 = arith.constant 0 : i32
    %c0_i32_2 = arith.constant 0 : i32
    return %c0_i32, %c0_i32_0, %c0_i32_1 : i32, i32, i32
  }
  func.func @transform_2(%arg0: i32) -> (i32, i32) {
    %c0_i32 = arith.constant 0 : i32
    %c0_i32_0 = arith.constant 0 : i32
    %c0_i32_1 = arith.constant 0 : i32
    return %c0_i32, %c0_i32_0 : i32, i32
  }
}

</mosaic_0001>

<bundles_post_ra>
// kernel: tpu_custom_call.1
= control target key start
LH: loop header
LB: loop body
LE: loop exit
PB: predicated region body
PF: predicated region fallthrough
CT: control target
= control target key end

     0   :  { %v574_v1 = vmov 0.0   ;;  %vm575_vm0 = vmmov 0   ;;  %vm36_vm1 = vcmask 261120   ;;  %s663_s0 = inlined_call_operand.vmem [shape: bf16[16,32], index: 0, kind: input, shape index: {}]   ;;  %s664_s1 = inlined_call_operand.vmem [shape: bf16[3,32,16], index: 1, kind: input, shape index: {}]   ;;  %s665_s2 = inlined_call_operand.hbm [shape: f32[16,16], index: 2, kind: output, shape index: {}]  }
   0x1   :  { %v535_v0 = vld [vmem:[%s664_s1 + $0x10] sm:$0xff]   ;;  %490 = vmatprep.subr.bf16.mxu1 %v574_v1  ;;  %482 = vmatprep.subr.bf16.mxu0 %v574_v1  ;;  %v536_v2 = vld [vmem:[%s664_s1] sm:$0xff]   ;;  %v537_v3 = vld [vmem:[%s664_s1 + $0x18] sm:$0xff]  }
   0x2   :  { %491 = vmatpush3.bf16.msra.mxu1 %v535_v0  ;;  %494 = vmatprep.mubr.msk.bf16.mxu1 %vm575_vm0, %v574_v1  ;;  %v539_v4 = vld [vmem:[%s664_s1 + $0x8] sm:$0xff]   ;;  %v538_v5 = vld [vmem:[%s663_s0] sm:$0xff]  }
   0x3   :  { %492 = vmatprep.subr.bf16.mxu1 %v574_v1  ;;  %483 = vmatpush3.bf16.msra.mxu0 %v536_v2  ;;  %v540_v6 = vld [vmem:[%s664_s1 + $0x20] sm:$0xff]  }
   0x4   :  { %484 = vmatprep.subr.bf16.mxu0 %v574_v1  ;;  %486 = vmatprep.mubr.msk.bf16.mxu0 %vm575_vm0, %v574_v1 }
   0x6   :  { %493 = vmatpush3.bf16.msra.mxu1 %v537_v3 }
   0x7   :  { %485 = vmatpush3.bf16.msra.mxu0 %v539_v4  ;;  %506 = vmatprep.subr.bf16.mxu1 %v574_v1 }
   0x8   :  { %7 = vsyncpa [#allocation3], 0  ;;  %498 = vmatprep.subr.bf16.mxu0 %v574_v1  ;;  %v541_v7 = vld [vmem:[%s664_s1 + $0x28] sm:$0xff]   ;;  %vm205_vm2 = vcmask 130048   ;;  %vm335_vm3 = vcmask 1043456   ;;  %v298_v32 = vlaneseq  ;;  %vm307_vm5 = vcmask 64512  }
   0x9   :  { %495 = vmatmul.mubr.msk.bf16.vlgmr.msra.gmra.mrb[0].mxu1 %vm36_vm1, %v538_v5  ;;  %s576_s1 = smov [#allocation2]  }
   0xa   :  { %487 = vmatmul.mubr.msk.bf16.vlgmr.msra.gmra.mrb[0].mxu0 %vm36_vm1, %v538_v5  ;;  %508 = vmatprep.mubr.msk.bf16.mxu1 %vm575_vm0, %v574_v1  ;;  %v299_v33 = vshrl.u32 %v298_v32, 7  ;;  %v301_v34 = vand.u32 127, %v298_v32  ;;  %s432_s22 = sshll.u32 %s576_s1, 4  ;;  %s433_s22 = int_to_ptr.vmem [resolvable:$true] %s432_s22 }
   0xb   :  { %499 = vmatpush3.bf16.msra.mxu0 %v540_v6  ;;  %502 = vmatprep.mubr.msk.bf16.mxu0 %vm575_vm0, %v574_v1  ;;  %s550_s23 = scalar_lea.vmem %s433_s22, 256  ;;  %p555_p1 = scmp.lt.s32.totalorder %s433_s22, %s433_s22 }
   0xc   :  { %500 = vmatprep.subr.bf16.mxu0 %v574_v1  ;;  %vm302_vm4 = vcmp.ge.s32.totalorder %v299_v33, %v301_v34  ;;  %p551_p0 = scmp.ne.s32.totalorder %s433_s22, %s550_s23  ;;  %p556_p2 = scmp.lt.s32.totalorder %s550_s23, %s550_s23 }
   0xe   :  { %p557_p3 = por %p556_p2, %p555_p1 }
   0xf   :  { %501 = vmatpush3.bf16.msra.mxu0 %v541_v7 }
  0x10   :  { %512 = vmatprep.subr.bf16.mxu0 %v574_v1  ;;  %p558_p4 = pnand %p557_p3, %p551_p0 }
  0x12   :  { %503 = vmatmul.mubr.msk.bf16.vlgmr.msra.gmra.mrb[4].mxu0 %vm36_vm1, %v538_v5 }
  0x13   :  { %514 = vmatprep.mubr.msk.bf16.mxu0 %vm575_vm0, %v574_v1 }
  0xdc   :  { %v134_v8 = vpop.f32.mrb[0].mxu1 }
  0xdd   :  { %v201_v9 = vpack.c.bf16 %v134_v8, %v134_v8  ;;  %v496_v10 = vpop.f32.mrb[1].mxu1  ;;  %v74_v11 = vpop.f32.mrb[0].mxu0 }
  0xde   :  { %v137_v12 = vpop.f32.mrb[2].mxu1  ;;  %v488_v13 = vpop.f32.mrb[1].mxu0  ;;  %v81_v17 = vmul.f32 0.25, %v74_v11 }
  0xdf   :  { %v210_v14 = vsel %vm205_vm2, %v201_v9, 0  ;;  %v202_v15 = vpack.c.bf16 %v137_v12, %v137_v12  ;;  %v497_v16 = vpop.f32.mrb[3].mxu1  ;;  %v77_v18 = vpop.f32.mrb[2].mxu0 }
  0xe0   :  { %507 = vmatpush3.bf16.xpose.msra.mxu1 %v210_v14  ;;  %v489_v19 = vpop.f32.mrb[3].mxu0  ;;  %v199_v21 = vpack.c.bf16 %v81_v17, %v81_v17  ;;  %v82_v22 = vmul.f32 0.25, %v77_v18 }
  0xe1   :  { %v256_v20 = vsel %vm205_vm2, %v202_v15, 0  ;;  %518 = vmatprep.subr.bf16.mxu1 %v574_v1 }
  0xe2   :  { %513 = vmatpush3.bf16.xpose.msra.mxu0 %v256_v20  ;;  %v200_v26 = vpack.c.bf16 %v82_v22, %v82_v22 }
  0xe3   :  { %524 = vmatprep.subr.bf16.mxu0 %v574_v1 }
  0xe5   :  { %v192_v23 = vpop.f32.mrb[4].mxu0 }
  0xe6   :  { %v203_v24 = vpack.c.bf16 %v192_v23, %v192_v23  ;;  %v504_v25 = vpop.f32.mrb[5].mxu0 }
  0xe7   :  { %509 = vmatmul.mubr.msk.bf16.vlgmr.msra.gmra.mrb[4].mxu1 %vm205_vm2, %v199_v21  ;;  %v195_v27 = vpop.f32.mrb[6].mxu0 }
  0xe8   :  { %v337_v28 = vsel %vm335_vm3, %v203_v24, 0  ;;  %v204_v29 = vpack.c.bf16 %v195_v27, %v195_v27  ;;  %v505_v30 = vpop.f32.mrb[7].mxu0  ;;  %520 = vmatprep.mubr.msk.bf16.mxu1 %vm575_vm0, %v574_v1 }
  0xe9   :  { %515 = vmatmul.mubr.msk.bf16.vlgmr.msra.gmra.mrb[8].mxu0 %vm205_vm2, %v200_v26  ;;  %519 = vmatpush3.bf16.msra.mxu1 %v337_v28 }
  0xea   :  { %v383_v31 = vsel %vm335_vm3, %v204_v29, 0  ;;  %526 = vmatprep.mubr.msk.bf16.mxu0 %vm575_vm0, %v574_v1 }
  0xeb   :  { %525 = vmatpush3.bf16.msra.mxu0 %v383_v31 }
 0x1ba   :  { %v246_v35 = vpop.f32.mrb[4].mxu1 }
 0x1bb   :  { %v305_v36 = vsel %vm302_vm4, %v246_v35, -1e+30  ;;  %v510_v37 = vpop.f32.mrb[5].mxu1 }
 0x1bc   :  { %v249_v38 = vpop.f32.mrb[6].mxu1  ;;  %v292_v39 = vpop.f32.mrb[8].mxu0  ;;  %v308_v40 = vsel %vm307_vm5, %v305_v36, -inf }
 0x1bd   :  { %v306_v41 = vsel %vm302_vm4, %v292_v39, -1e+30  ;;  %309 = vmax.xlane.f32.xlu0 %v308_v40  ;;  %v511_v42 = vpop.f32.mrb[7].mxu1  ;;  %v516_v43 = vpop.f32.mrb[9].mxu0 }
 0x1be   :  { %v295_v44 = vpop.f32.mrb[10].mxu0  ;;  %v311_v46 = vsel %vm307_vm5, %v306_v41, -inf }
 0x1bf   :  { %v517_v45 = vpop.f32.mrb[11].mxu0 }
 0x1c1   :  { %312 = vmax.xlane.f32.xlu0 %v311_v46 }
 0x24a   :  { %v310_v47 = vpop.xlane.xlu0 %309 }
 0x24b   :  { %v314_v48 = vsub.f32 %v305_v36, %v310_v47 }
 0x24d   :  { %v316_v49 = vmul.f32 1.442695, %v314_v48 }
 0x24e   :  { %v313_v50 = vpop.xlane.xlu0 %312 }
 0x24f   :  { %542 = vpow2.f32 %v316_v49  ;;  %v315_v51 = vsub.f32 %v306_v41, %v313_v50 }
 0x251   :  { %v318_v52 = vmul.f32 1.442695, %v315_v51 }
 0x253   :  { %544 = vpow2.f32 %v318_v52 }
 0x259   :  { %v543_v53 = vpop.eup %542 }
 0x25a   :  { %v320_v54 = vsel %vm307_vm5, %v543_v53, 0.0 }
 0x25b   :  { %321 = vadd.xlane.f32.xlu1 %v320_v54 }
 0x25d   :  { %v545_v55 = vpop.eup %544 }
 0x25e   :  { %v323_v56 = vsel %vm307_vm5, %v545_v55, 0.0 }
 0x25f   :  { %324 = vadd.xlane.f32.xlu1 %v323_v56 }
 0x2e8   :  { %v322_v57 = vpop.xlane.xlu1 %321 }
 0x2e9   :  { %546 = vrcp.f32 %v322_v57 }
 0x2ec   :  { %v325_v58 = vpop.xlane.xlu1 %324 }
 0x2ed   :  { %548 = vrcp.f32 %v325_v58 }
 0x2f3   :  { %v547_v59 = vpop.eup %546 }
 0x2f4   :  { %v328_v60 = vmul.f32 %v547_v59, %v543_v53 }
 0x2f6   :  { %v330_v61 = vpack.c.bf16 %v328_v60, %v328_v60 }
 0x2f7   :  { %v549_v62 = vpop.eup %548 }
 0x2f8   :  { %v329_v63 = vmul.f32 %v549_v62, %v545_v55  ;;  %521 = vmatmul.mubr.msk.bf16.vlgmr.msra.gmra.mrb[8].mxu1 %vm307_vm5, %v330_v61 }
 0x2fa   :  { %v331_v0 = vpack.c.bf16 %v329_v63, %v329_v63 }
 0x2fc   :  { %527 = vmatmul.mubr.msk.bf16.vlgmr.msra.gmra.mrb[12].mxu0 %vm307_vm5, %v331_v0 }
 0x3cb   :  { %v373_v1 = vpop.f32.mrb[8].mxu1 }
 0x3cc   :  { %425 = vst.msk [vmem:[#allocation2] sm:$0xff] %vm205_vm2, %v373_v1  ;;  %v522_v2 = vpop.f32.mrb[9].mxu1 }
 0x3cd   :  { %v376_v3 = vpop.f32.mrb[10].mxu1 }
 0x3ce   :  { %v523_v4 = vpop.f32.mrb[11].mxu1 }
 0x3cf   :  { %v419_v5 = vpop.f32.mrb[12].mxu0 }
 0x3d0   :  { %426 = vst.msk [vmem:[#allocation2 + $0x8] sm:$0xff] %vm205_vm2, %v419_v5  ;;  %v528_v6 = vpop.f32.mrb[13].mxu0 }
 0x3d1   :  { %v422_v7 = vpop.f32.mrb[14].mxu0 }
 0x3d2   :  { %561 = shalt.err (!%p558_p4)
}
 0x3d3   :  { %s562_s26 = scalar_lea.hbm %s665_s2, 256 }
 0x3d4   :  { %p563_p5 = scmp.ne.s32.totalorder %s665_s2, %s562_s26  ;;  %p566_p6 = scmp.lt.u32.totalorder %s562_s26, %s665_s2 }
 0x3d6   :  { %p568_p7 = pnand %p566_p6, %p563_p5 }
 0x3d8   :  { %571 = shalt.err (!%p568_p7)
}
 0x3d9   :  { %s577_s3 = smov 128   ;;  %s578_s4 = smov 8   ;;  %v529_v8 = vpop.f32.mrb[15].mxu0 }
 0x3da   :  { %438 = dma.vmem_to_hbm [thread:$0]  %s433_s22, 256, %s665_s2, [#allocation3], %s577_s3, %s577_s3, %s578_s4  }
 0x3db   :  { %572 = dma.done.wait [#allocation3], 256  }
 0x3dc   :  { %573 = vsyncadd [#allocation3], 4294967040 }
 0x3dd   :  { %442 = vsyncpa [#allocation3], 1 }

</bundles_post_ra>
